<compile_context>
chip_gen: v7x
topology: tpu7x:2x2x1
jax: 0.10.0
libtpu: 0.0.40
codegen_flags: <defaults>
</compile_context>

<pallas_src>
import functools

import jax
import jax.numpy as jnp
from jax.experimental import pallas as pl
from jax.experimental.pallas import tpu as pltpu


def _gcn2_fused_kernel(
    src_c_ref, dst_c_ref, dst_r_ref, x_ref,
    w1_ref, b1_ref, w2_ref, b2_ref,
    fc1w_src_ref, fc1w_dst_ref, fc1b_ref,
    fc2w_ref, fc2b_ref,
    out_ref,
    *, num_classes: int, reassociate_l1: bool):
    e_pad = src_c_ref.shape[0]
    n = x_ref.shape[0]
    f32 = jnp.float32

    # ---- one-hot edge selection matrices (VPU iota compares, no gather op) ---
    iota_en = jax.lax.broadcasted_iota(jnp.int32, (e_pad, n), 1)
    s_src = (iota_en == src_c_ref[...]).astype(f32)        # (E, N)
    s_dst = (iota_en == dst_c_ref[...]).astype(f32)        # (E, N)
    iota_ne = jax.lax.broadcasted_iota(jnp.int32, (n, e_pad), 1)
    s_dst_t = (iota_ne == dst_r_ref[...]).astype(f32)      # (N, E)

    # ---- dense normalized adjacency, PyG gcn_norm semantics -----------------
    # a_cnt[d, s] = multiplicity of edge s->d  (one MXU matmul, no XLA scatter)
    a_cnt = jnp.dot(s_dst_t, s_src, preferred_element_type=f32)   # (N, N)
    row = jax.lax.broadcasted_iota(jnp.int32, (n, n), 0)
    col = jax.lax.broadcasted_iota(jnp.int32, (n, n), 1)
    eye = (row == col).astype(f32)
    adj = a_cnt * (1.0 - eye) + eye      # drop existing self loops, add one/node
    deg = jnp.sum(adj, axis=1, keepdims=True)                # (N, 1)
    dinv = jnp.where(deg > 0.0, jax.lax.rsqrt(deg), 0.0)     # (N, 1)

    # D^-1/2 (A+I) D^-1/2 @ V == dinv * ((A+I) @ (dinv * V)); MXU operands bf16.
    adj_bf = adj.astype(jnp.bfloat16)

    def aggregate(v):                                        # v: (N, k) f32
        return dinv * jnp.dot(adj_bf, (dinv * v).astype(jnp.bfloat16),
                              preferred_element_type=f32)

    x = x_ref[...]
    if reassociate_l1:
        # (A_hat @ X) @ W1: contraction width of the N x N matmul is F < hidden.
        h1 = jnp.maximum(
            jnp.dot(aggregate(x), w1_ref[...], preferred_element_type=f32)
            + b1_ref[...], 0.0)
    else:
        h1 = jnp.maximum(
            aggregate(jnp.dot(x, w1_ref[...], preferred_element_type=f32))
            + b1_ref[...], 0.0)

    h2 = jnp.maximum(
        aggregate(jnp.dot(h1, w2_ref[...], preferred_element_type=f32))
        + b2_ref[...], 0.0)

    # ---- edge MLP: cat[x_src, x_dst] @ W == x_src @ W_top + x_dst @ W_bot ----
    x_src = jnp.dot(s_src, h2, preferred_element_type=f32)   # (E, H) MXU gather
    x_dst = jnp.dot(s_dst, h2, preferred_element_type=f32)   # (E, H)
    z = jnp.maximum(
        jnp.dot(x_src, fc1w_src_ref[...], preferred_element_type=f32)
        + jnp.dot(x_dst, fc1w_dst_ref[...], preferred_element_type=f32)
        + fc1b_ref[...], 0.0)
    logits = jnp.dot(z, fc2w_ref[...], preferred_element_type=f32) + fc2b_ref[...]

    # ---- log_softmax over the real classes; padded lanes masked out ---------
    c_pad = out_ref.shape[1]
    cls = jax.lax.broadcasted_iota(jnp.int32, (e_pad, c_pad), 1)
    logits = jnp.where(cls < num_classes, logits, -1e30)
    m = jnp.max(logits, axis=1, keepdims=True)
    s = logits - m
    lse = jnp.log(jnp.sum(jnp.exp(s), axis=1, keepdims=True))
    out_ref[...] = s - lse            # lane-dense (E_pad, 128) store


def _vmem():
    return pl.BlockSpec(memory_space=pltpu.MemorySpace.VMEM)


@jax.jit
def gcn2_forward(x, edge_index, params):
    """GCN2 forward. x: (N, F) f32, edge_index: (2, E) i32 -> (E, C) log-probs."""
    n, f = x.shape
    e = edge_index.shape[1]
    hidden = params["w1"].shape[1]
    c = params["fc2_w"].shape[1]

    # --- static padding (glue): lane-dense output, sublane-aligned edge dim ---
    e_pad = ((e + 7) // 8) * 8
    c_pad = max(128, ((c + 127) // 128) * 128)
    pad_e = e_pad - e

    # Padded edges are (0,0) self loops -> removed by the self-loop reset, and
    # their output rows are sliced off below.
    src = jnp.pad(edge_index[0].astype(jnp.int32), (0, pad_e))
    dst = jnp.pad(edge_index[1].astype(jnp.int32), (0, pad_e))
    src_c = src.reshape(e_pad, 1)
    dst_c = dst.reshape(e_pad, 1)
    dst_r = dst.reshape(1, e_pad)

    fc1_w_src = params["fc1_w"][:hidden]       # acts on x_src
    fc1_w_dst = params["fc1_w"][hidden:]       # acts on x_dst
    fc2_w = jnp.pad(params["fc2_w"], ((0, 0), (0, c_pad - c)))
    fc2_b = jnp.pad(params["fc2_b"], ((0, 0), (0, c_pad - c)))

    kernel = functools.partial(
        _gcn2_fused_kernel, num_classes=c, reassociate_l1=(f < hidden))

    out_full = pl.pallas_call(
        kernel,
        out_shape=jax.ShapeDtypeStruct((e_pad, c_pad), jnp.float32),
        in_specs=[_vmem()] * 13,
        out_specs=_vmem(),
    )(src_c, dst_c, dst_r, x,
      params["w1"], params["b1"], params["w2"], params["b2"],
      fc1_w_src, fc1_w_dst, params["fc1_b"],
      fc2_w, fc2_b)
    return out_full[:e, :c]


def gcn2_reference(x, edge_index, params):
    """Pure-JAX f32 reference with PyG GCNConv (gcn_norm) semantics."""
    n = x.shape[0]
    src, dst = edge_index[0], edge_index[1]
    w = jnp.where(src == dst, 0.0, 1.0)                    # drop existing loops
    adj = jnp.zeros((n, n), jnp.float32).at[dst, src].add(w)
    adj = adj + jnp.eye(n, dtype=jnp.float32)              # add one loop / node
    deg = jnp.sum(adj, axis=1)
    dinv = jnp.where(deg > 0, 1.0 / jnp.sqrt(deg), 0.0)
    a_hat = adj * dinv[:, None] * dinv[None, :]
    h = jax.nn.relu(a_hat @ x @ params["w1"] + params["b1"])
    h = jax.nn.relu(a_hat @ h @ params["w2"] + params["b2"])
    ef = jnp.concatenate([h[src], h[dst]], axis=1)
    z = jax.nn.relu(ef @ params["fc1_w"] + params["fc1_b"])
    logits = z @ params["fc2_w"] + params["fc2_b"]
    return jax.nn.log_softmax(logits, axis=1)


def init_params(key, num_features, num_classes, hidden=16):
    ks = jax.random.split(key, 8)
    s = 0.1
    return {
        "w1": s * jax.random.normal(ks[0], (num_features, hidden), jnp.float32),
        "b1": s * jax.random.normal(ks[1], (1, hidden), jnp.float32),
        "w2": s * jax.random.normal(ks[2], (hidden, hidden), jnp.float32),
        "b2": s * jax.random.normal(ks[3], (1, hidden), jnp.float32),
        "fc1_w": s * jax.random.normal(ks[4], (2 * hidden, hidden), jnp.float32),
        "fc1_b": s * jax.random.normal(ks[5], (1, hidden), jnp.float32),
        "fc2_w": s * jax.random.normal(ks[6], (hidden, num_classes), jnp.float32),
        "fc2_b": s * jax.random.normal(ks[7], (1, num_classes), jnp.float32),
    }


if __name__ == "__main__":
    num_nodes, num_features, num_classes, num_edges = 16, 8, 4, 32

    key = jax.random.PRNGKey(0)
    kx, ke, kp = jax.random.split(key, 3)
    x = jax.random.normal(kx, (num_nodes, num_features), jnp.float32)
    edge_index = jax.random.randint(ke, (2, num_edges), 0, num_nodes, jnp.int32)
    params = init_params(kp, num_features, num_classes)

    out = jax.block_until_ready(gcn2_forward(x, edge_index, params))
    assert out.shape == (num_edges, num_classes)

    # rows of log_softmax must exponentiate-sum to 1
    row_sums = jnp.sum(jnp.exp(out), axis=1)
    assert bool(jnp.all(jnp.abs(row_sums - 1.0) < 1e-4))

    # loose-tolerance check vs. pure-JAX f32 reference (A_hat matmuls run in
    # bf16 on the MXU inside the kernel)
    ref = gcn2_reference(x, edge_index, params)
    assert bool(jnp.max(jnp.abs(out - ref)) < 5e-2)

    print("KERNEL_OK")
</pallas_src>

<mosaic_0001>
module attributes {stable_mosaic.version = 11 : i64} {
  func.func @_gcn2_fused_kernel(%arg0: memref<32x1xi32, #tpu.memory_space<vmem>>, %arg1: memref<32x1xi32, #tpu.memory_space<vmem>>, %arg2: memref<1x32xi32, #tpu.memory_space<vmem>>, %arg3: memref<16x8xf32, #tpu.memory_space<vmem>>, %arg4: memref<8x16xf32, #tpu.memory_space<vmem>>, %arg5: memref<1x16xf32, #tpu.memory_space<vmem>>, %arg6: memref<16x16xf32, #tpu.memory_space<vmem>>, %arg7: memref<1x16xf32, #tpu.memory_space<vmem>>, %arg8: memref<16x16xf32, #tpu.memory_space<vmem>>, %arg9: memref<16x16xf32, #tpu.memory_space<vmem>>, %arg10: memref<1x16xf32, #tpu.memory_space<vmem>>, %arg11: memref<16x128xf32, #tpu.memory_space<vmem>>, %arg12: memref<1x128xf32, #tpu.memory_space<vmem>>, %arg13: memref<32x128xf32, #tpu.memory_space<vmem>>) attributes {dimension_semantics = [], scalar_prefetch = 0 : i64, scratch_operands = 0 : i64, tpu.core_type = #tpu.core_type<tc>} {
    %0 = tpu.iota {dimensions = array<i32: 1>} : vector<32x16xi32>
    %c0 = arith.constant 0 : index
    %c0_0 = arith.constant 0 : index
    %1 = vector.load %arg0[%c0, %c0_0] : memref<32x1xi32, #tpu.memory_space<vmem>>, vector<32x1xi32>
    %2 = vector.broadcast %1 : vector<32x1xi32> to vector<32x16xi32>
    %3 = arith.cmpi eq, %0, %2 : vector<32x16xi32>
    %4 = arith.extui %3 : vector<32x16xi1> to vector<32x16xi32>
    %5 = arith.sitofp %4 : vector<32x16xi32> to vector<32x16xf32>
    %c0_1 = arith.constant 0 : index
    %c0_2 = arith.constant 0 : index
    %6 = vector.load %arg1[%c0_1, %c0_2] : memref<32x1xi32, #tpu.memory_space<vmem>>, vector<32x1xi32>
    %7 = vector.broadcast %6 : vector<32x1xi32> to vector<32x16xi32>
    %8 = arith.cmpi eq, %0, %7 : vector<32x16xi32>
    %9 = arith.extui %8 : vector<32x16xi1> to vector<32x16xi32>
    %10 = arith.sitofp %9 : vector<32x16xi32> to vector<32x16xf32>
    %11 = tpu.iota {dimensions = array<i32: 1>} : vector<16x32xi32>
    %c0_3 = arith.constant 0 : index
    %c0_4 = arith.constant 0 : index
    %12 = vector.load %arg2[%c0_3, %c0_4] : memref<1x32xi32, #tpu.memory_space<vmem>>, vector<1x32xi32>
    %13 = vector.broadcast %12 : vector<1x32xi32> to vector<16x32xi32>
    %14 = arith.cmpi eq, %11, %13 : vector<16x32xi32>
    %15 = arith.extui %14 : vector<16x32xi1> to vector<16x32xi32>
    %16 = arith.sitofp %15 : vector<16x32xi32> to vector<16x32xf32>
    %cst = arith.constant dense<0.000000e+00> : vector<16x16xf32>
    %17 = tpu.matmul %16, %5, %cst {dimension_numbers = #tpu.dot_dimension_numbers<[1], [0], [0], [1], [0, 0, 1, 1], [], []>} : vector<16x32xf32>, vector<32x16xf32>, vector<16x16xf32> -> vector<16x16xf32>
    %18 = tpu.iota {dimensions = array<i32: 0>} : vector<16x16xi32>
    %19 = tpu.iota {dimensions = array<i32: 1>} : vector<16x16xi32>
    %20 = arith.cmpi eq, %18, %19 : vector<16x16xi32>
    %21 = arith.extui %20 : vector<16x16xi1> to vector<16x16xi32>
    %22 = arith.sitofp %21 : vector<16x16xi32> to vector<16x16xf32>
    %cst_5 = arith.constant 1.000000e+00 : f32
    %23 = vector.broadcast %cst_5 : f32 to vector<16x16xf32>
    %24 = arith.subf %23, %22 : vector<16x16xf32>
    %25 = arith.mulf %17, %24 : vector<16x16xf32>
    %26 = arith.addf %25, %22 : vector<16x16xf32>
    %cst_6 = arith.constant dense<0.000000e+00> : vector<16xf32>
    %27 = vector.multi_reduction <add>, %26, %cst_6 [1] : vector<16x16xf32> to vector<16xf32>
    %28 = vector.shape_cast %27 : vector<16xf32> to vector<16x1xf32>
    %cst_7 = arith.constant 0.000000e+00 : f32
    %29 = vector.broadcast %cst_7 : f32 to vector<16x1xf32>
    %30 = arith.cmpf ogt, %28, %29 : vector<16x1xf32>
    %31 = math.rsqrt %28 : vector<16x1xf32>
    %cst_8 = arith.constant 0.000000e+00 : f32
    %32 = vector.broadcast %cst_8 : f32 to vector<16x1xf32>
    %33 = arith.select %30, %31, %32 : vector<16x1xi1>, vector<16x1xf32>
    %34 = arith.truncf %26 : vector<16x16xf32> to vector<16x16xbf16>
    %c0_9 = arith.constant 0 : index
    %c0_10 = arith.constant 0 : index
    %35 = vector.load %arg3[%c0_9, %c0_10] : memref<16x8xf32, #tpu.memory_space<vmem>>, vector<16x8xf32>
    %36 = vector.broadcast %33 : vector<16x1xf32> to vector<16x8xf32>
    %37 = arith.mulf %36, %35 : vector<16x8xf32>
    %38 = arith.truncf %37 : vector<16x8xf32> to vector<16x8xbf16>
    %cst_11 = arith.constant dense<0.000000e+00> : vector<16x8xf32>
    %39 = tpu.matmul %34, %38, %cst_11 {dimension_numbers = #tpu.dot_dimension_numbers<[1], [0], [0], [1], [0, 0, 1, 1], [], []>} : vector<16x16xbf16>, vector<16x8xbf16>, vector<16x8xf32> -> vector<16x8xf32>
    %40 = vector.broadcast %33 : vector<16x1xf32> to vector<16x8xf32>
    %41 = arith.mulf %40, %39 : vector<16x8xf32>
    %c0_12 = arith.constant 0 : index
    %c0_13 = arith.constant 0 : index
    %42 = vector.load %arg4[%c0_12, %c0_13] : memref<8x16xf32, #tpu.memory_space<vmem>>, vector<8x16xf32>
    %cst_14 = arith.constant dense<0.000000e+00> : vector<16x16xf32>
    %43 = tpu.matmul %41, %42, %cst_14 {dimension_numbers = #tpu.dot_dimension_numbers<[1], [0], [0], [1], [0, 0, 1, 1], [], []>} : vector<16x8xf32>, vector<8x16xf32>, vector<16x16xf32> -> vector<16x16xf32>
    %c0_15 = arith.constant 0 : index
    %c0_16 = arith.constant 0 : index
    %44 = vector.load %arg5[%c0_15, %c0_16] : memref<1x16xf32, #tpu.memory_space<vmem>>, vector<1x16xf32>
    %45 = vector.broadcast %44 : vector<1x16xf32> to vector<16x16xf32>
    %46 = arith.addf %43, %45 : vector<16x16xf32>
    %cst_17 = arith.constant 0.000000e+00 : f32
    %47 = vector.broadcast %cst_17 : f32 to vector<16x16xf32>
    %48 = arith.maximumf %46, %47 : vector<16x16xf32>
    %c0_18 = arith.constant 0 : index
    %c0_19 = arith.constant 0 : index
    %49 = vector.load %arg6[%c0_18, %c0_19] : memref<16x16xf32, #tpu.memory_space<vmem>>, vector<16x16xf32>
    %cst_20 = arith.constant dense<0.000000e+00> : vector<16x16xf32>
    %50 = tpu.matmul %48, %49, %cst_20 {dimension_numbers = #tpu.dot_dimension_numbers<[1], [0], [0], [1], [0, 0, 1, 1], [], []>} : vector<16x16xf32>, vector<16x16xf32>, vector<16x16xf32> -> vector<16x16xf32>
    %51 = vector.broadcast %33 : vector<16x1xf32> to vector<16x16xf32>
    %52 = arith.mulf %51, %50 : vector<16x16xf32>
    %53 = arith.truncf %52 : vector<16x16xf32> to vector<16x16xbf16>
    %cst_21 = arith.constant dense<0.000000e+00> : vector<16x16xf32>
    %54 = tpu.matmul %34, %53, %cst_21 {dimension_numbers = #tpu.dot_dimension_numbers<[1], [0], [0], [1], [0, 0, 1, 1], [], []>} : vector<16x16xbf16>, vector<16x16xbf16>, vector<16x16xf32> -> vector<16x16xf32>
    %55 = vector.broadcast %33 : vector<16x1xf32> to vector<16x16xf32>
    %56 = arith.mulf %55, %54 : vector<16x16xf32>
    %c0_22 = arith.constant 0 : index
    %c0_23 = arith.constant 0 : index
    %57 = vector.load %arg7[%c0_22, %c0_23] : memref<1x16xf32, #tpu.memory_space<vmem>>, vector<1x16xf32>
    %58 = vector.broadcast %57 : vector<1x16xf32> to vector<16x16xf32>
    %59 = arith.addf %56, %58 : vector<16x16xf32>
    %cst_24 = arith.constant 0.000000e+00 : f32
    %60 = vector.broadcast %cst_24 : f32 to vector<16x16xf32>
    %61 = arith.maximumf %59, %60 : vector<16x16xf32>
    %cst_25 = arith.constant dense<0.000000e+00> : vector<32x16xf32>
    %62 = tpu.matmul %5, %61, %cst_25 {dimension_numbers = #tpu.dot_dimension_numbers<[1], [0], [0], [1], [0, 0, 1, 1], [], []>} : vector<32x16xf32>, vector<16x16xf32>, vector<32x16xf32> -> vector<32x16xf32>
    %cst_26 = arith.constant dense<0.000000e+00> : vector<32x16xf32>
    %63 = tpu.matmul %10, %61, %cst_26 {dimension_numbers = #tpu.dot_dimension_numbers<[1], [0], [0], [1], [0, 0, 1, 1], [], []>} : vector<32x16xf32>, vector<16x16xf32>, vector<32x16xf32> -> vector<32x16xf32>
    %c0_27 = arith.constant 0 : index
    %c0_28 = arith.constant 0 : index
    %64 = vector.load %arg8[%c0_27, %c0_28] : memref<16x16xf32, #tpu.memory_space<vmem>>, vector<16x16xf32>
    %cst_29 = arith.constant dense<0.000000e+00> : vector<32x16xf32>
    %65 = tpu.matmul %62, %64, %cst_29 {dimension_numbers = #tpu.dot_dimension_numbers<[1], [0], [0], [1], [0, 0, 1, 1], [], []>} : vector<32x16xf32>, vector<16x16xf32>, vector<32x16xf32> -> vector<32x16xf32>
    %c0_30 = arith.constant 0 : index
    %c0_31 = arith.constant 0 : index
    %66 = vector.load %arg9[%c0_30, %c0_31] : memref<16x16xf32, #tpu.memory_space<vmem>>, vector<16x16xf32>
    %cst_32 = arith.constant dense<0.000000e+00> : vector<32x16xf32>
    %67 = tpu.matmul %63, %66, %cst_32 {dimension_numbers = #tpu.dot_dimension_numbers<[1], [0], [0], [1], [0, 0, 1, 1], [], []>} : vector<32x16xf32>, vector<16x16xf32>, vector<32x16xf32> -> vector<32x16xf32>
    %68 = arith.addf %65, %67 : vector<32x16xf32>
    %c0_33 = arith.constant 0 : index
    %c0_34 = arith.constant 0 : index
    %69 = vector.load %arg10[%c0_33, %c0_34] : memref<1x16xf32, #tpu.memory_space<vmem>>, vector<1x16xf32>
    %70 = vector.broadcast %69 : vector<1x16xf32> to vector<32x16xf32>
    %71 = arith.addf %68, %70 : vector<32x16xf32>
    %cst_35 = arith.constant 0.000000e+00 : f32
    %72 = vector.broadcast %cst_35 : f32 to vector<32x16xf32>
    %73 = arith.maximumf %71, %72 : vector<32x16xf32>
    %c0_36 = arith.constant 0 : index
    %c0_37 = arith.constant 0 : index
    %74 = vector.load %arg11[%c0_36, %c0_37] : memref<16x128xf32, #tpu.memory_space<vmem>>, vector<16x128xf32>
    %cst_38 = arith.constant dense<0.000000e+00> : vector<32x128xf32>
    %75 = tpu.matmul %73, %74, %cst_38 {dimension_numbers = #tpu.dot_dimension_numbers<[1], [0], [0], [1], [0, 0, 1, 1], [], []>} : vector<32x16xf32>, vector<16x128xf32>, vector<32x128xf32> -> vector<32x128xf32>
    %c0_39 = arith.constant 0 : index
    %c0_40 = arith.constant 0 : index
    %76 = vector.load %arg12[%c0_39, %c0_40] : memref<1x128xf32, #tpu.memory_space<vmem>>, vector<1x128xf32>
    %77 = vector.broadcast %76 : vector<1x128xf32> to vector<32x128xf32>
    %78 = arith.addf %75, %77 : vector<32x128xf32>
    %79 = tpu.iota {dimensions = array<i32: 1>} : vector<32x128xi32>
    %c4_i32 = arith.constant 4 : i32
    %80 = vector.broadcast %c4_i32 : i32 to vector<32x128xi32>
    %81 = arith.cmpi slt, %79, %80 : vector<32x128xi32>
    %cst_41 = arith.constant -1.000000e+30 : f32
    %82 = vector.broadcast %cst_41 : f32 to vector<32x128xf32>
    %83 = arith.select %81, %78, %82 : vector<32x128xi1>, vector<32x128xf32>
    %cst_42 = arith.constant dense<0xFF800000> : vector<32xf32>
    %84 = vector.multi_reduction <maximumf>, %83, %cst_42 [1] : vector<32x128xf32> to vector<32xf32>
    %85 = vector.shape_cast %84 : vector<32xf32> to vector<32x1xf32>
    %86 = vector.broadcast %85 : vector<32x1xf32> to vector<32x128xf32>
    %87 = arith.subf %83, %86 : vector<32x128xf32>
    %88 = math.exp %87 : vector<32x128xf32>
    %cst_43 = arith.constant dense<0.000000e+00> : vector<32xf32>
    %89 = vector.multi_reduction <add>, %88, %cst_43 [1] : vector<32x128xf32> to vector<32xf32>
    %90 = vector.shape_cast %89 : vector<32xf32> to vector<32x1xf32>
    %91 = math.log %90 : vector<32x1xf32>
    %92 = vector.broadcast %91 : vector<32x1xf32> to vector<32x128xf32>
    %93 = arith.subf %87, %92 : vector<32x128xf32>
    %c0_44 = arith.constant 0 : index
    %c0_45 = arith.constant 0 : index
    %94 = vector.load %arg13[%c0_44, %c0_45] : memref<32x128xf32, #tpu.memory_space<vmem>>, vector<32x128xf32>
    tpu.vector_store %arg13[%c0_44, %c0_45], %93 {strides = array<i32>} : memref<32x128xf32, #tpu.memory_space<vmem>>, vector<32x128xf32>,
    return
  }
}

</mosaic_0001>

<bundles_post_ra>
// kernel: gcn2_forward.1
= control target key start
LH: loop header
LB: loop body
LE: loop exit
PB: predicated region body
PF: predicated region fallthrough
CT: control target
= control target key end

     0   :  { %v1310_v0 = vmov 0   ;;  %v1311_v5 = vmov 0.0   ;;  %v45_v6 = vlaneseq  ;;  %vm112_vm1 = vcmask 261120   ;;  %s1567_s0 = inlined_call_operand.vmem [shape: s32[32,1], index: 0, kind: input, shape index: {}]   ;;  %s1568_s2 = inlined_call_operand.vmem [shape: s32[1,32], index: 2, kind: input, shape index: {}]   ;;  %s1569_s1 = inlined_call_operand.vmem [shape: s32[32,1], index: 1, kind: input, shape index: {}]   ;;  %s1570_s3 = inlined_call_operand.vmem [shape: f32[16,8], index: 3, kind: input, shape index: {}]   ;;  %s1571_s4 = inlined_call_operand.vmem [shape: f32[8,16], index: 4, kind: input, shape index: {}]   ;;  %s1572_s6 = inlined_call_operand.vmem [shape: f32[16,16], index: 6, kind: input, shape index: {}]   ;;  %s1573_s5 = inlined_call_operand.vmem [shape: f32[1,16], index: 5, kind: input, shape index: {}]   ;;  %s1574_s7 = inlined_call_operand.vmem [shape: f32[1,16], index: 7, kind: input, shape index: {}]   ;;  %s1575_s9 = inlined_call_operand.vmem [shape: f32[16,16], index: 9, kind: input, shape index: {}]   ;;  %s1576_s8 = inlined_call_operand.vmem [shape: f32[16,16], index: 8, kind: input, shape index: {}]   ;;  %s1577_s11 = inlined_call_operand.vmem [shape: f32[16,128], index: 11, kind: input, shape index: {}]   ;;  %s1578_s10 = inlined_call_operand.vmem [shape: f32[1,16], index: 10, kind: input, shape index: {}]   ;;  %s1579_s12 = inlined_call_operand.vmem [shape: f32[1,128], index: 12, kind: input, shape index: {}]   ;;  %s1580_s13 = inlined_call_operand.vmem [shape: f32[32,128], index: 13, kind: output, shape index: {}]  }
   0x1   :  { %1289 = vset.pattern.permute.xlu1 %v1310_v0  ;;  %1288 = vset.pattern.permute.xlu0 %v1310_v0  ;;  %v49_v1 = vld [vmem:[%s1567_s0 + $0x10] sm:$0xff]  ;;  %v47_v2 = vld [vmem:[%s1567_s0] sm:$0xff]  ;;  %v50_v3 = vld [vmem:[%s1567_s0 + $0x18] sm:$0xff]  ;;  %v1312_v14 = vmov 1.0|1.0   ;;  %vm205_vm10 = vcmask 130048  }
   0x2   :  { %58 = vperm.xlu1 %1289, %v49_v1   ;;  %52 = vperm.xlu0 %1288, %v47_v2   ;;  %v48_v4 = vld [vmem:[%s1567_s0 + $0x8] sm:$0xff]  ;;  %v1397_v7 = vand.u32 127, %v45_v6  ;;  %v1076_v8 = vld [vmem:[%s1568_s2] ss:$0 sm:$0xff]  ;;  %v191_v15 = vshrl.u32 %v45_v6, 7  ;;  %v78_v31 = vld [vmem:[%s1569_s1 + $0x18] sm:$0xff] }
   0x3   :  { %1174 = vmatprep.subr.bf16.mxu1 %v1311_v5  ;;  %v76_v30 = vld [vmem:[%s1569_s1 + $0x8] sm:$0xff]  ;;  %v75_v32 = vld [vmem:[%s1569_s1] sm:$0xff]  ;;  %v77_v33 = vld [vmem:[%s1569_s1 + $0x10] sm:$0xff]  ;;  %vm1313_vm11 = vmmov 0   ;;  %vm278_vm14 = vcmask 64512  }
   0x4   :  { %vm108_vm0 = vcmp.eq.s32.totalorder %v1397_v7, %v1076_v8  ;;  %v192_v16 = vadd.s32 8, %v191_v15  ;;  %vm193_vm9 = vcmp.eq.s32.totalorder %v191_v15, %v1397_v7  ;;  %1176 = vmatprep.mubr.msk.bf16.mxu1 %vm1313_vm11, %v1311_v5  ;;  %v220_v36 = vld [vmem:[%s1570_s3 + $0x8] sm:$0xff]  ;;  %v219_v38 = vld [vmem:[%s1570_s3] sm:$0xff] }
   0x5   :  { %v1077_v9 = vsel %vm108_vm0, 1.0, %v1311_v5  ;;  %v1084_v18 = vsel %vm193_vm9, 1.0, %v1311_v5  ;;  %v270_v45 = vld [vmem:[%s1571_s4] sm:$0xff]  ;;  %v363_v53 = vld [vmem:[%s1572_s6 + $0x8] sm:$0xff] }
   0x6   :  { %61 = vperm.xlu1 %1289, %v50_v3   ;;  %55 = vperm.xlu0 %1288, %v48_v4   ;;  %vm194_vm8 = vcmp.eq.s32.totalorder %v192_v16, %v1397_v7  ;;  %v199_v20 = vsub.f32 1.0, %v1084_v18  ;;  %v362_v52 = vld [vmem:[%s1572_s6] sm:$0xff] }
   0x7   :  { %1171 = vmatprep.mubr.msk.f32.mxu0 %vm112_vm1, %v1077_v9  ;;  %v1085_v17 = vsel %vm194_vm8, 1.0, %v1311_v5  ;;  %v1256_v54 = vpack.c.bf16 %v363_v53, %v362_v52  ;;  %v1087_v55 = vld [vmem:[%s1573_s5] ss:$0 sm:$0xff] }
   0x8   :  { %v200_v19 = vsub.f32 1.0, %v1085_v17 }
  0x81   :  { %v1405_v10 = vpop.permute.xlu1 %58  ;;  %v1407_v11 = vpop.permute.xlu0 %52 }
  0x82   :  { %vm65_vm3 = vcmp.eq.s32.totalorder %v1397_v7, %v1405_v10  ;;  %vm63_vm4 = vcmp.eq.s32.totalorder %v1397_v7, %v1407_v11 }
  0x83   :  { %v1068_v62 = vsel %vm63_vm4, 1.0, %v1311_v5 }
  0x85   :  { %v1409_v12 = vpop.permute.xlu1 %61  ;;  %v1411_v13 = vpop.permute.xlu0 %55 }
  0x86   :  { %vm64_vm2 = vcmp.eq.s32.totalorder %v1397_v7, %v1411_v13  ;;  %vm66_vm5 = vcmp.eq.s32.totalorder %v1397_v7, %v1409_v12 }
  0x87   :  { %vm1248_vm6 = vmpackc.low %vm64_vm2, %vm63_vm4  ;;  %v1071_v13 = vsel %vm66_vm5, 1.0, %v1311_v5 }
  0x88   :  { %1249 = vmatprep.subr.msk.bf16.mxu0 %vm1248_vm6, %v1312_v14  ;;  %vm1252_vm7 = vmpackc.low %vm66_vm5, %vm65_vm3 }
  0x89   :  { %1251 = vmatpush3.bf16.msk.msra.mxu0 %vm1248_vm6, %v1312_v14 }
  0x8a   :  { %1253 = vmatprep.subr.msk.bf16.mxu0 %vm1252_vm7, %v1312_v14 }
  0x8d   :  { %1255 = vmatpush3.bf16.msk.msra.mxu0 %vm1252_vm7, %v1312_v14 }
  0x8e   :  { %1180 = vmatprep.subr.mxu0 %v270_v45 }
  0x90   :  { %1172 = vmatmul.mubr.msk.f32.vlgmr.msra.gmra.mrb[0].mxu0 %vm112_vm1, %v1077_v9  ;;  %v1093_v9 = vld [vmem:[%s1574_s7] ss:$0 sm:$0xff] }
  0x91   :  { %1181 = vmatpush3.msra.mxu0 %v270_v45  ;;  %v1110_v45 = vld [vmem:[%s1578_s10] ss:$0 sm:$0xff] }
  0x92   :  { %1192 = vmatprep.subr.bf16.mxu0 %v1311_v5 }
 0x163   :  { %v1173_v21 = vpop.f32.mrb[0].mxu0 }
 0x164   :  { %v202_v22 = vmul.f32 %v1173_v21, %v200_v19  ;;  %v181_v23 = vpop.f32.mrb[1].mxu0  ;;  %v698_v21 = vld [vmem:[%s1575_s9] sm:$0xff] }
 0x165   :  { %v201_v24 = vmul.f32 %v199_v20, %v181_v23 }
 0x166   :  { %v204_v25 = vadd.f32 %v1085_v17, %v202_v22  ;;  %v699_v22 = vld [vmem:[%s1575_s9 + $0x8] sm:$0xff] }
 0x167   :  { %v203_v26 = vadd.f32 %v1084_v18, %v201_v24 }
 0x168   :  { %v209_v27 = vsel %vm205_vm10, %v204_v25, 0.0 }
 0x169   :  { %210 = vadd.xlane.f32.xlu1 %v209_v27  ;;  %v206_v28 = vsel %vm205_vm10, %v203_v26, 0.0  ;;  %v1440_v29 = vpack.c.bf16 %v204_v25, %v203_v26  ;;  %v1268_v27 = vpack.c.bf16 %v699_v22, %v698_v21 }
 0x16a   :  { %207 = vadd.xlane.f32.xlu0 %v206_v28 }
 0x17a   :  { %83 = vperm.xlu1 %1289, %v76_v30  }
 0x17e   :  { %89 = vperm.xlu1 %1289, %v78_v31   ;;  %v1070_v31 = vsel %vm65_vm3, 1.0, %v1311_v5 }
 0x180   :  { %80 = vperm.xlu0 %1288, %v75_v32  }
 0x184   :  { %86 = vperm.xlu0 %1288, %v77_v33   ;;  %v696_v33 = vld [vmem:[%s1576_s8] sm:$0xff] }
 0x1f6   :  { %v211_v34 = vpop.xlane.xlu1 %210 }
 0x1f7   :  { %1290 = vrsqrt.f32 %v211_v34  ;;  %v208_v35 = vpop.xlane.xlu0 %207  ;;  %vm213_vm12 = vcmp.gt.f32.partialorder %v211_v34, 0.0  ;;  %v697_v34 = vld [vmem:[%s1576_s8 + $0x8] sm:$0xff] }
 0x1f8   :  { %1292 = vrsqrt.f32 %v208_v35  ;;  %vm212_vm13 = vcmp.gt.f32.partialorder %v208_v35, 0.0  ;;  %v1272_v35 = vpack.c.bf16 %v697_v34, %v696_v33 }
 0x1fa   :  { %v84_v20 = vpop.permute.xlu1 %83 }
 0x1fb   :  { %vm92_vm0 = vcmp.eq.s32.totalorder %v1397_v7, %v84_v20 }
 0x1fc   :  { %v1073_v30 = vsel %vm92_vm0, 1.0, %v1311_v5 }
 0x1fe   :  { %v90_v28 = vpop.permute.xlu1 %89 }
 0x1ff   :  { %v81_v3 = vpop.permute.xlu0 %80  ;;  %vm94_vm4 = vcmp.eq.s32.totalorder %v1397_v7, %v90_v28 }
 0x200   :  { %vm91_vm15 = vcmp.eq.s32.totalorder %v1397_v7, %v81_v3  ;;  %v1075_v10 = vsel %vm94_vm4, 1.0, %v1311_v5 }
 0x201   :  { %v1291_v37 = vpop.eup %1290  ;;  %v1072_v6 = vsel %vm91_vm15, 1.0, %v1311_v5 }
 0x202   :  { %v1293_v39 = vpop.eup %1292  ;;  %v217_v40 = vsel %vm213_vm12, %v1291_v37, 0.0 }
 0x203   :  { %v216_v41 = vsel %vm212_vm13, %v1293_v39, 0.0  ;;  %v222_v42 = vmul.f32 %v220_v36, %v217_v40  ;;  %v87_v25 = vpop.permute.xlu0 %86 }
 0x204   :  { %v221_v43 = vmul.f32 %v219_v38, %v216_v41  ;;  %vm93_vm1 = vcmp.eq.s32.totalorder %v1397_v7, %v87_v25 }
 0x205   :  { %v1074_v32 = vsel %vm93_vm1, 1.0, %v1311_v5 }
 0x206   :  { %v223_v44 = vpack.c.bf16 %v222_v42, %v221_v43  ;;  %v909_v42 = vld [vmem:[%s1577_s11] sm:$0xff]  ;;  %v910_v43 = vld [vmem:[%s1577_s11 + $0x8] sm:$0xff] }
 0x208   :  { %1175 = vmatpush3.bf16.msra.mxu1 %v223_v44  ;;  %v1276_v44 = vpack.c.bf16 %v910_v43, %v909_v42 }
 0x209   :  { %1257 = vmatprep.subr.bf16.mxu1 %v1256_v54 }
 0x20b   :  { %1177 = vmatmul.mubr.msk.bf16.vlgmr.msra.gmra.mrb[0].mxu1 %vm205_vm10, %v1440_v29 }
 0x20c   :  { %1259 = vmatpush3.bf16.msra.mxu1 %v1256_v54 }
 0x2de   :  { %v261_v46 = vpop.f32.mrb[0].mxu1 }
 0x2df   :  { %v268_v47 = vmul.f32 %v261_v46, %v216_v41  ;;  %v1178_v48 = vpop.f32.mrb[1].mxu1 }
 0x2e0   :  { %v264_v49 = vpop.f32.mrb[2].mxu1 }
 0x2e1   :  { %v269_v50 = vmul.f32 %v264_v49, %v217_v40  ;;  %v1179_v51 = vpop.f32.mrb[3].mxu1  ;;  %1182 = vmatprep.mubr.msk.f32.mxu0 %vm278_vm14, %v268_v47 }
 0x2e3   :  { %1183 = vmatmul.mubr.msk.f32.vlgmr.msra.gmra.mrb[2].mxu0 %vm278_vm14, %v269_v50 }
 0x2e4   :  { %1194 = vmatprep.mubr.msk.bf16.mxu0 %vm1313_vm11, %v1311_v5 }
 0x3b6   :  { %v1184_v56 = vpop.f32.mrb[2].mxu0 }
 0x3b7   :  { %v357_v57 = vadd.f32 %v1184_v56, %v1087_v55  ;;  %v351_v58 = vpop.f32.mrb[3].mxu0 }
 0x3b8   :  { %v352_v59 = vadd.f32 %v1087_v55, %v351_v58  ;;  %v1111_v58 = vld [vmem:[%s1579_s12] ss:$0 sm:$0xff] }
 0x3b9   :  { %v361_v61 = vmax.f32 %v357_v57, 0.0 }
 0x3ba   :  { %v360_v60 = vmax.f32 %v352_v59, 0.0 }
 0x3bc   :  { %1189 = vmatprep.mubr.msk.f32.mxu1 %vm205_vm10, %v360_v60 }
 0x3bd   :  { %1190 = vmatmul.mubr.msk.f32.vlgmr.msra.gmra.mrb[4].mxu1 %vm205_vm10, %v361_v61 }
 0x3be   :  { %1202 = vmatprep.mubr.msk.f32.mxu1 %vm205_vm10, %v1068_v62 }
 0x490   :  { %v1191_v63 = vpop.f32.mrb[4].mxu1 }
 0x491   :  { %v446_v0 = vmul.f32 %v1191_v63, %v217_v40  ;;  %v436_v1 = vpop.f32.mrb[5].mxu1 }
 0x492   :  { %v445_v2 = vmul.f32 %v436_v1, %v216_v41 }
 0x494   :  { %v447_v4 = vpack.c.bf16 %v446_v0, %v445_v2 }
 0x496   :  { %1193 = vmatpush3.bf16.msra.mxu0 %v447_v4 }
 0x499   :  { %1195 = vmatmul.mubr.msk.bf16.vlgmr.msra.gmra.mrb[4].mxu0 %vm205_vm10, %v1440_v29  ;;  %v1069_v29 = vsel %vm64_vm2, 1.0, %v1311_v5  ;;  %vm1015_vm2 = vcmp.lt.s32.totalorder %v1397_v7, 4 }
 0x49a   :  { %1212 = vmatprep.mubr.msk.f32.mxu0 %vm205_vm10, %v1072_v6 }
 0x56c   :  { %v482_v8 = vpop.f32.mrb[4].mxu0 }
 0x56d   :  { %v489_v11 = vmul.f32 %v482_v8, %v216_v41  ;;  %v1196_v14 = vpop.f32.mrb[5].mxu0 }
 0x56e   :  { %v485_v15 = vpop.f32.mrb[6].mxu0 }
 0x56f   :  { %v498_v16 = vadd.f32 %v1093_v9, %v489_v11  ;;  %v490_v17 = vmul.f32 %v485_v15, %v217_v40  ;;  %v1197_v18 = vpop.f32.mrb[7].mxu0 }
 0x571   :  { %v499_v19 = vadd.f32 %v1093_v9, %v490_v17  ;;  %v500_v23 = vmax.f32 %v498_v16, 0.0 }
 0x573   :  { %v501_v24 = vmax.f32 %v499_v19, 0.0 }
 0x575   :  { %v1260_v26 = vpack.c.bf16 %v501_v24, %v500_v23 }
 0x577   :  { %1261 = vmatprep.subr.bf16.mxu1 %v1260_v26  ;;  %1265 = vmatprep.subr.bf16.mxu0 %v1260_v26 }
 0x578   :  { %1263 = vmatpush3.bf16.msra.mxu1 %v1260_v26  ;;  %1267 = vmatpush3.bf16.msra.mxu0 %v1260_v26 }
 0x579   :  { %1269 = vmatprep.subr.bf16.mxu1 %v1268_v27  ;;  %1277 = vmatprep.subr.bf16.mxu0 %v1276_v44 }
 0x57b   :  { %1203 = vmatmul.mubr.msk.f32.vlgmr.msra.gmra.mrb[6].mxu1 %vm205_vm10, %v1069_v29  ;;  %1213 = vmatmul.mubr.msk.f32.vlgmr.msra.gmra.mrb[8].mxu0 %vm205_vm10, %v1073_v30 }
 0x57c   :  { %1205 = vmatprep.mubr.msk.f32.mxu1 %vm205_vm10, %v1070_v31  ;;  %1215 = vmatprep.mubr.msk.f32.mxu0 %vm205_vm10, %v1074_v32 }
 0x57d   :  { %1271 = vmatpush3.bf16.msra.mxu1 %v1268_v27  ;;  %1279 = vmatpush3.bf16.msra.mxu0 %v1276_v44 }
 0x57e   :  { %1273 = vmatprep.subr.bf16.mxu1 %v1272_v35 }
 0x57f   :  { %1206 = vmatmul.mubr.msk.f32.gmra.mrb[8].mxu1 %vm205_vm10, %v1071_v13  ;;  %1216 = vmatmul.mubr.msk.f32.gmra.mrb[10].mxu0 %vm205_vm10, %v1075_v10 }
 0x64e   :  { %v1204_v36 = vpop.f32.mrb[6].mxu1  ;;  %v1214_v37 = vpop.f32.mrb[8].mxu0 }
 0x64f   :  { %v580_v12 = vpop.f32.mrb[7].mxu1  ;;  %v677_v38 = vpop.f32.mrb[9].mxu0 }
 0x650   :  { %1222 = vmatprep.mubr.msk.f32.mxu1 %vm205_vm10, %v677_v38 }
 0x651   :  { %1223 = vmatmul.mubr.msk.f32.vlgmr.msra.gmra.mrb[10].mxu1 %vm205_vm10, %v1214_v37 }
 0x652   :  { %v1207_v5 = vpop.f32.mrb[8].mxu1  ;;  %v1217_v39 = vpop.f32.mrb[10].mxu0  ;;  %1275 = vmatpush3.bf16.msra.mxu1 %v1272_v35 }
 0x653   :  { %v590_v40 = vpop.f32.mrb[9].mxu1  ;;  %v687_v41 = vpop.f32.mrb[11].mxu0 }
 0x654   :  { %1225 = vmatprep.mubr.msk.f32.mxu1 %vm205_vm10, %v687_v41 }
 0x655   :  { %1226 = vmatmul.mubr.msk.f32.gmra.mrb[12].mxu1 %vm205_vm10, %v1217_v39 }
 0x656   :  { %1232 = vmatprep.mubr.msk.f32.mxu1 %vm205_vm10, %v580_v12 }
 0x659   :  { %1233 = vmatmul.mubr.msk.f32.vlgmr.msra.gmra.mrb[10].mxu1 %vm205_vm10, %v1204_v36 }
 0x65a   :  { %1235 = vmatprep.mubr.msk.f32.mxu1 %vm205_vm10, %v590_v40 }
 0x65d   :  { %1236 = vmatmul.mubr.msk.f32.gmra.mrb[12].mxu1 %vm205_vm10, %v1207_v5 }
 0x72c   :  { %v1234_v46 = vpop.f32.mrb[10].mxu1 }
 0x72d   :  { %v902_v47 = vadd.f32 %v1234_v46, %v1110_v45  ;;  %v875_v48 = vpop.f32.mrb[11].mxu1 }
 0x72e   :  { %v901_v49 = vadd.f32 %v1110_v45, %v875_v48 }
 0x72f   :  { %v906_v52 = vmax.f32 %v902_v47, 0.0 }
 0x730   :  { %v905_v50 = vmax.f32 %v901_v49, 0.0  ;;  %v1237_v51 = vpop.f32.mrb[12].mxu1 }
 0x731   :  { %v904_v53 = vadd.f32 %v1237_v51, %v1110_v45  ;;  %v885_v54 = vpop.f32.mrb[13].mxu1 }
 0x732   :  { %v903_v55 = vadd.f32 %v1110_v45, %v885_v54  ;;  %1242 = vmatprep.mubr.msk.f32.mxu0 %vm205_vm10, %v905_v50 }
 0x733   :  { %1243 = vmatmul.mubr.msk.f32.vlgmr.msra.gmra.mrb[12].mxu0 %vm205_vm10, %v906_v52  ;;  %v908_v57 = vmax.f32 %v904_v53, 0.0 }
 0x734   :  { %v907_v56 = vmax.f32 %v903_v55, 0.0 }
 0x736   :  { %1245 = vmatprep.mubr.msk.f32.mxu0 %vm205_vm10, %v907_v56 }
 0x737   :  { %1246 = vmatmul.mubr.msk.f32.gmra.mrb[14].mxu0 %vm205_vm10, %v908_v57 }
 0x806   :  { %v1244_v59 = vpop.f32.mrb[12].mxu0 }
 0x807   :  { %v1002_v60 = vadd.f32 %v1244_v59, %v1111_v58  ;;  %v996_v61 = vpop.f32.mrb[13].mxu0 }
 0x808   :  { %v997_v62 = vadd.f32 %v1111_v58, %v996_v61 }
 0x809   :  { %v1017_v63 = vsel %vm1015_vm2, %v1002_v60, -1e+30 }
 0x80a   :  { %1022 = vmax.xlane.f32.xlu1 %v1017_v63  ;;  %v1247_v0 = vpop.f32.mrb[14].mxu0  ;;  %v1016_v1 = vsel %vm1015_vm2, %v997_v62, -1e+30 }
 0x80b   :  { %1020 = vmax.xlane.f32.xlu0 %v1016_v1  ;;  %v1006_v2 = vpop.f32.mrb[15].mxu0  ;;  %v1012_v4 = vadd.f32 %v1247_v0, %v1111_v58 }
 0x80c   :  { %v1007_v3 = vadd.f32 %v1111_v58, %v1006_v2 }
 0x80d   :  { %v1019_v8 = vsel %vm1015_vm2, %v1012_v4, -1e+30 }
 0x80e   :  { %v1018_v6 = vsel %vm1015_vm2, %v1007_v3, -1e+30 }
 0x80f   :  { %1024 = vmax.xlane.f32.xlu0 %v1018_v6 }
 0x813   :  { %1026 = vmax.xlane.f32.xlu0 %v1019_v8 }
 0x897   :  { %v1023_v9 = vpop.xlane.xlu1 %1022 }
 0x898   :  { %v1029_v11 = vsub.f32 %v1017_v63, %v1023_v9  ;;  %v1021_v14 = vpop.xlane.xlu0 %1020 }
 0x899   :  { %v1028_v15 = vsub.f32 %v1016_v1, %v1021_v14 }
 0x89a   :  { %v1034_v7 = vmul.f32 1.442695, %v1029_v11 }
 0x89b   :  { %v1032_v16 = vmul.f32 1.442695, %v1028_v15 }
 0x89c   :  { %1294 = vpow2.f32 %v1034_v7  ;;  %v1025_v17 = vpop.xlane.xlu0 %1024 }
 0x89d   :  { %1296 = vpow2.f32 %v1032_v16  ;;  %v1030_v18 = vsub.f32 %v1018_v6, %v1025_v17 }
 0x89f   :  { %v1036_v19 = vmul.f32 1.442695, %v1030_v18 }
 0x8a0   :  { %v1027_v20 = vpop.xlane.xlu0 %1026 }
 0x8a1   :  { %1298 = vpow2.f32 %v1036_v19  ;;  %v1031_v21 = vsub.f32 %v1019_v8, %v1027_v20 }
 0x8a3   :  { %v1038_v22 = vmul.f32 1.442695, %v1031_v21 }
 0x8a5   :  { %1300 = vpow2.f32 %v1038_v22 }
 0x8a6   :  { %v1295_v23 = vpop.eup %1294 }
 0x8a7   :  { %v1297_v24 = vpop.eup %1296  ;;  %1042 = vadd.xlane.f32.xlu0 %v1295_v23 }
 0x8a8   :  { %1040 = vadd.xlane.f32.xlu1 %v1297_v24 }
 0x8ab   :  { %v1299_v25 = vpop.eup %1298 }
 0x8ac   :  { %1044 = vadd.xlane.f32.xlu1 %v1299_v25 }
 0x8af   :  { %v1301_v26 = vpop.eup %1300 }
 0x8b0   :  { %1046 = vadd.xlane.f32.xlu0 %v1301_v26 }
 0x934   :  { %v1043_v27 = vpop.xlane.xlu0 %1042 }
 0x935   :  { %1302 = vlog2.f32 %v1043_v27  ;;  %v1041_v28 = vpop.xlane.xlu1 %1040 }
 0x936   :  { %1304 = vlog2.f32 %v1041_v28 }
 0x939   :  { %v1045_v29 = vpop.xlane.xlu1 %1044 }
 0x93a   :  { %1306 = vlog2.f32 %v1045_v29 }
 0x93d   :  { %v1047_v30 = vpop.xlane.xlu0 %1046 }
 0x93e   :  { %1308 = vlog2.f32 %v1047_v30 }
 0x93f   :  { %v1303_v31 = vpop.eup %1302 }
 0x940   :  { %v1305_v32 = vpop.eup %1304  ;;  %v1051_v13 = vmul.f32 0.6931472, %v1303_v31 }
 0x941   :  { %v1049_v10 = vmul.f32 0.6931472, %v1305_v32 }
 0x942   :  { %v1057_v33 = vsub.f32 %v1029_v11, %v1051_v13 }
 0x943   :  { %v1056_v34 = vsub.f32 %v1028_v15, %v1049_v10 }
 0x944   :  { %v1307_v35 = vpop.eup %1306  ;;  %1061 = vst [vmem:[%s1580_s13 + $0x8] sm:$0xff] %v1057_v33 }
 0x945   :  { %1060 = vst [vmem:[%s1580_s13] sm:$0xff] %v1056_v34  ;;  %v1053_v36 = vmul.f32 0.6931472, %v1307_v35 }
 0x947   :  { %v1058_v37 = vsub.f32 %v1030_v18, %v1053_v36 }
 0x948   :  { %v1309_v12 = vpop.eup %1308 }
 0x949   :  { %1062 = vst [vmem:[%s1580_s13 + $0x10] sm:$0xff] %v1058_v37  ;;  %v1055_v38 = vmul.f32 0.6931472, %v1309_v12 }
 0x94b   :  { %v1059_v5 = vsub.f32 %v1031_v21, %v1055_v38 }
 0x94d   :  { %1063 = vst [vmem:[%s1580_s13 + $0x18] sm:$0xff] %v1059_v5 }

</bundles_post_ra>
